<compile_context>
chip_gen: v6e
topology: v6e:2x2x1
jax: 0.10.0
libtpu: 0.0.40
codegen_flags: <defaults>
</compile_context>

<pallas_src>
import functools
import math

import jax
import jax.numpy as jnp
from jax import lax
from jax.experimental import pallas as pl
from jax.experimental.pallas import tpu as pltpu


# ----------------------------------------------------------------------------
# One-time probe: which shift convention does pltpu.roll use on this backend?
#   +1 : pltpu.roll(x, s, ax) == jnp.roll(x, s, ax)
#   -1 : reversed convention
#    0 : probe failed -> use slice+concat shifts (always correct, VALU path)
# ----------------------------------------------------------------------------
@functools.lru_cache(maxsize=None)
def _roll_sign():
    try:
        def probe(x_ref, o_ref):
            o_ref[...] = pltpu.roll(x_ref[...], 1, 1)

        x = jnp.arange(8 * 256, dtype=jnp.float32).reshape(8, 256)
        out = jax.block_until_ready(
            pl.pallas_call(
                probe, out_shape=jax.ShapeDtypeStruct((8, 256), jnp.float32)
            )(x)
        )
        if bool(jnp.array_equal(out, jnp.roll(x, 1, axis=1))):
            return 1
        if bool(jnp.array_equal(out, jnp.roll(x, -1, axis=1))):
            return -1
        return 0
    except Exception:
        return 0


def _sine_kernel(x_ref, o_ref, *, alpha, gamma, beta, pi, W, roll_sign):
    # Block: (TB, H*W); each row is one image flattened row-major.
    xf = x_ref[...].astype(jnp.float32)          # f32 compute even for bf16 I/O
    HW = xf.shape[-1]

    # Loop-invariant boundary masks on a single (1, HW) row; jnp.where
    # broadcasts them over TB (no per-row integer iota / modulo work).
    lane = lax.broadcasted_iota(jnp.int32, (1, HW), 1)
    col = lane % W
    first_row = lane < W
    last_row = lane >= HW - W
    first_col = col == 0
    last_col = col == W - 1

    def shift(s):
        # y[:, i] = xf[:, (i - s) mod HW]  == jnp.roll(xf, s, axis=1), 0 < s < HW
        if roll_sign != 0:
            amt = s if roll_sign > 0 else (HW - s) % HW
            return pltpu.roll(xf, amt, 1)        # XLU vrot slot
        cut = HW - s                              # fallback: slice + concat
        return jnp.concatenate([xf[:, cut:], xf[:, :cut]], axis=1)

    # Replication-padded 5-point stencil: shifting by W moves a whole image
    # row along the flattened lane axis; wrapped / border lanes are clamped
    # back to x itself (exactly ReplicationPad2d(1) edge behavior).
    up = jnp.where(first_row, xf, shift(W))       # x[i-1, j]
    down = jnp.where(last_row, xf, shift(HW - W)) # x[i+1, j]
    left = jnp.where(first_col, xf, shift(1))     # x[i, j-1]
    right = jnp.where(last_col, xf, shift(HW - 1))  # x[i, j+1]

    # alpha*(sum4 - 4x) + x - beta*sin(pi*x)  ==  alpha*sum4 + gamma*x - beta*sin(pi*x)
    sum4 = (up + down) + (left + right)
    out = alpha * sum4 + gamma * xf - beta * jnp.sin(pi * xf)
    o_ref[...] = out.astype(o_ref.dtype)


def _vmem_budget_bytes():
    """Scoped-VMEM budget: half of physical VMEM (v5e/v6e: 64 MiB, v7x: 32 MiB)."""
    try:
        cap = int(getattr(pltpu.get_tpu_info(), "vmem_capacity_bytes", 0))
    except Exception:
        cap = 0
    if cap <= 0:
        cap = 64 << 20  # conservative fallback: assume v7x-sized VMEM
    return cap // 2


def _pick_batch_tile(batch, hw, itemsize, *, target_block_bytes):
    """Batch-tile rows per grid step.

    - Always a multiple of the sublane packing (8 f32 / 16 bf16 / 32 int8) so
      vreg layout stays dense, OR equal to the full batch (always legal).
    - Capped by `target_block_bytes` (~4 MiB v5e/v6e, ~2 MiB v7x) to amortize
      the ~0.35 us per-grid-step cost without blowing scoped VMEM.
    - Capped at ~half the batch so the 'parallel' grid has >= 2 steps and both
      v7x TensorCores get work.
    Ragged last blocks are handled by grid = cdiv(B, tb) (Pallas masks stores).
    """
    pack = max(1, 4 // max(1, itemsize))
    min_tb = 8 * pack
    if batch <= min_tb:
        return batch                                  # full-extent block
    row_bytes = max(1, hw * itemsize)
    max_tb = max(min_tb, (target_block_bytes // row_bytes) // min_tb * min_tb)
    half = -(-((batch + 1) // 2) // min_tb) * min_tb  # round_up(ceil(B/2), min_tb)
    return max(min_tb, min(max_tb, half))


def sine_forward(x, *, dt, c, r, h):
    """Pallas equivalent of Sine.forward. x is NCHW with C == 1."""
    alpha = float(dt * c / h ** 2)
    beta = float(r * dt)
    gamma = 1.0 - 4.0 * alpha
    pi = math.pi  # torch.acos(torch.zeros(1)).item() * 2

    N, C, H, W = x.shape
    assert C == 1, "conv weight is [1,1,3,3]; input must have 1 channel"
    assert H >= 2 and W >= 2, "replication-padded stencil needs H, W >= 2"

    B = N * C
    HW = H * W
    xr = x.reshape(B, HW)                       # free reshape (no transpose)

    budget = _vmem_budget_bytes()
    tb = _pick_batch_tile(B, HW, xr.dtype.itemsize,
                          target_block_bytes=budget // 16)
    grid = (pl.cdiv(B, tb),)

    kernel = functools.partial(
        _sine_kernel, alpha=alpha, gamma=gamma, beta=beta, pi=pi, W=W,
        roll_sign=_roll_sign())

    out = pl.pallas_call(
        kernel,
        out_shape=jax.ShapeDtypeStruct((B, HW), x.dtype),
        grid=grid,
        in_specs=[pl.BlockSpec((tb, HW), lambda i: (i, 0))],
        out_specs=pl.BlockSpec((tb, HW), lambda i: (i, 0)),
        compiler_params=pltpu.CompilerParams(
            dimension_semantics=("parallel",),
            vmem_limit_bytes=budget,
        ),
    )(xr)

    return out.reshape(N, C, H, W)


def _sine_reference(x, *, dt, c, r, h):
    """Plain-JAX reference (replication pad + stencil), for validation."""
    alpha = dt * c / h ** 2
    beta = r * dt
    pi = math.pi
    xp = jnp.pad(x, ((0, 0), (0, 0), (1, 1), (1, 1)), mode="edge")
    z = (xp[:, :, :-2, 1:-1] + xp[:, :, 2:, 1:-1]
         + xp[:, :, 1:-1, :-2] + xp[:, :, 1:-1, 2:]
         - 4.0 * xp[:, :, 1:-1, 1:-1])
    return alpha * z + x - beta * jnp.sin(pi * x)


if __name__ == "__main__":
    params = dict(dt=0.1, c=1.0, r=0.5, h=1.0)
    key = jax.random.PRNGKey(0)
    k1, k2, k3 = jax.random.split(key, 3)

    # Case 1: module-shaped input (single channel, 16x16 grid), f32.
    x1 = jax.random.normal(k1, (2, 1, 16, 16), dtype=jnp.float32)
    out1 = jax.block_until_ready(sine_forward(x1, **params))
    ref1 = _sine_reference(x1, **params)
    assert out1.shape == x1.shape and out1.dtype == x1.dtype
    assert float(jnp.max(jnp.abs(out1 - ref1))) < 1e-5

    # Case 2: larger batch -> multi-step 'parallel' grid with a ragged last block.
    x2 = jax.random.normal(k2, (20, 1, 16, 16), dtype=jnp.float32)
    out2 = jax.block_until_ready(sine_forward(x2, **params))
    ref2 = _sine_reference(x2, **params)
    assert float(jnp.max(jnp.abs(out2 - ref2))) < 1e-5

    # Case 3: bf16 I/O (bandwidth-bound v5e/v6e path); compute stays f32 in-kernel.
    x3 = jax.random.normal(k3, (4, 1, 16, 16), dtype=jnp.bfloat16)
    out3 = jax.block_until_ready(sine_forward(x3, **params))
    ref3 = _sine_reference(x3.astype(jnp.float32), **params)
    assert out3.dtype == jnp.bfloat16
    assert float(jnp.max(jnp.abs(out3.astype(jnp.float32) - ref3))) < 0.1

    print("KERNEL_OK")
</pallas_src>

<mosaic_0001>
module attributes {stable_mosaic.version = 11 : i64} {
  func.func @probe(%arg0: memref<8x256xf32, #tpu.memory_space<vmem>>, %arg1: memref<8x256xf32, #tpu.memory_space<vmem>>) attributes {dimension_semantics = [], scalar_prefetch = 0 : i64, scratch_operands = 0 : i64, tpu.core_type = #tpu.core_type<tc>} {
    %c0 = arith.constant 0 : index
    %c0_0 = arith.constant 0 : index
    %0 = vector.load %arg0[%c0, %c0_0] : memref<8x256xf32, #tpu.memory_space<vmem>>, vector<8x256xf32>
    %c1_i32 = arith.constant 1 : i32
    %1 = tpu.dynamic_rotate %0 by %c1_i32 dim 1 : vector<8x256xf32>, i32 -> vector<8x256xf32>
    %c0_1 = arith.constant 0 : index
    %c0_2 = arith.constant 0 : index
    %2 = vector.load %arg1[%c0_1, %c0_2] : memref<8x256xf32, #tpu.memory_space<vmem>>, vector<8x256xf32>
    tpu.vector_store %arg1[%c0_1, %c0_2], %1 {strides = array<i32>} : memref<8x256xf32, #tpu.memory_space<vmem>>, vector<8x256xf32>,
    return
  }
}

module attributes {stable_mosaic.version = 11 : i64} {
  func.func @_sine_kernel(%arg0: i32, %arg1: memref<2x256xf32, #tpu.memory_space<vmem>>, %arg2: memref<2x256xf32, #tpu.memory_space<vmem>>) attributes {dimension_semantics = [#tpu.dimension_semantics<parallel>], iteration_bounds = array<i64: 1>, scalar_prefetch = 0 : i64, scratch_operands = 0 : i64, tpu.core_type = #tpu.core_type<tc>, window_params = [{transform_indices = @transform_0, window_bounds = array<i64: 2, 256>}, {transform_indices = @transform_1, window_bounds = array<i64: 2, 256>}]} {
    %c0 = arith.constant 0 : index
    %c0_0 = arith.constant 0 : index
    %0 = vector.load %arg1[%c0, %c0_0] : memref<2x256xf32, #tpu.memory_space<vmem>>, vector<2x256xf32>
    %1 = tpu.iota {dimensions = array<i32: 1>} : vector<1x256xi32>
    %c16_i32 = arith.constant 16 : i32
    %c0_i32 = arith.constant 0 : i32
    %2 = arith.cmpi eq, %c16_i32, %c0_i32 : i32
    %c1_i32 = arith.constant 1 : i32
    %3 = arith.select %2, %c1_i32, %c16_i32 : i32
    %4 = vector.broadcast %3 : i32 to vector<1x256xi32>
    %5 = arith.remsi %1, %4 : vector<1x256xi32>
    %c0_i32_1 = arith.constant 0 : i32
    %6 = vector.broadcast %c0_i32_1 : i32 to vector<1x256xi32>
    %7 = arith.cmpi ne, %5, %6 : vector<1x256xi32>
    %c0_i32_2 = arith.constant 0 : i32
    %8 = vector.broadcast %c0_i32_2 : i32 to vector<1x256xi32>
    %9 = arith.cmpi slt, %5, %8 : vector<1x256xi32>
    %c0_i32_3 = arith.constant 0 : i32
    %10 = arith.cmpi slt, %3, %c0_i32_3 : i32
    %11 = vector.broadcast %10 : i1 to vector<1x256xi1>
    %12 = vector.broadcast %11 : vector<1x256xi1> to vector<1x256xi1>
    %13 = arith.xori %9, %12 : vector<1x256xi1>
    %14 = arith.andi %13, %7 : vector<1x256xi1>
    %15 = vector.broadcast %3 : i32 to vector<1x256xi32>
    %16 = arith.addi %5, %15 : vector<1x256xi32>
    %17 = arith.select %14, %16, %5 : vector<1x256xi1>, vector<1x256xi32>
    %c16_i32_4 = arith.constant 16 : i32
    %18 = vector.broadcast %c16_i32_4 : i32 to vector<1x256xi32>
    %19 = arith.cmpi slt, %1, %18 : vector<1x256xi32>
    %c240_i32 = arith.constant 240 : i32
    %20 = vector.broadcast %c240_i32 : i32 to vector<1x256xi32>
    %21 = arith.cmpi sge, %1, %20 : vector<1x256xi32>
    %c0_i32_5 = arith.constant 0 : i32
    %22 = vector.broadcast %c0_i32_5 : i32 to vector<1x256xi32>
    %23 = arith.cmpi eq, %17, %22 : vector<1x256xi32>
    %c15_i32 = arith.constant 15 : i32
    %24 = vector.broadcast %c15_i32 : i32 to vector<1x256xi32>
    %25 = arith.cmpi eq, %17, %24 : vector<1x256xi32>
    %26 = vector.extract_strided_slice %0 {offsets = [0, 240], sizes = [2, 16], strides = [1, 1]} : vector<2x256xf32> to vector<2x16xf32>
    %27 = vector.extract_strided_slice %0 {offsets = [0, 0], sizes = [2, 240], strides = [1, 1]} : vector<2x256xf32> to vector<2x240xf32>
    %28 = tpu.concatenate %26, %27 in 1 : vector<2x16xf32>, vector<2x240xf32> -> vector<2x256xf32>
    %29 = vector.shape_cast %19 : vector<1x256xi1> to vector<1x256xi1>
    %30 = vector.broadcast %29 : vector<1x256xi1> to vector<2x256xi1>
    %31 = arith.select %30, %0, %28 : vector<2x256xi1>, vector<2x256xf32>
    %32 = vector.extract_strided_slice %0 {offsets = [0, 16], sizes = [2, 240], strides = [1, 1]} : vector<2x256xf32> to vector<2x240xf32>
    %33 = vector.extract_strided_slice %0 {offsets = [0, 0], sizes = [2, 16], strides = [1, 1]} : vector<2x256xf32> to vector<2x16xf32>
    %34 = tpu.concatenate %32, %33 in 1 : vector<2x240xf32>, vector<2x16xf32> -> vector<2x256xf32>
    %35 = vector.shape_cast %21 : vector<1x256xi1> to vector<1x256xi1>
    %36 = vector.broadcast %35 : vector<1x256xi1> to vector<2x256xi1>
    %37 = arith.select %36, %0, %34 : vector<2x256xi1>, vector<2x256xf32>
    %38 = vector.extract_strided_slice %0 {offsets = [0, 255], sizes = [2, 1], strides = [1, 1]} : vector<2x256xf32> to vector<2x1xf32>
    %39 = vector.extract_strided_slice %0 {offsets = [0, 0], sizes = [2, 255], strides = [1, 1]} : vector<2x256xf32> to vector<2x255xf32>
    %40 = tpu.concatenate %38, %39 in 1 : vector<2x1xf32>, vector<2x255xf32> -> vector<2x256xf32>
    %41 = vector.shape_cast %23 : vector<1x256xi1> to vector<1x256xi1>
    %42 = vector.broadcast %41 : vector<1x256xi1> to vector<2x256xi1>
    %43 = arith.select %42, %0, %40 : vector<2x256xi1>, vector<2x256xf32>
    %44 = vector.extract_strided_slice %0 {offsets = [0, 1], sizes = [2, 255], strides = [1, 1]} : vector<2x256xf32> to vector<2x255xf32>
    %45 = vector.extract_strided_slice %0 {offsets = [0, 0], sizes = [2, 1], strides = [1, 1]} : vector<2x256xf32> to vector<2x1xf32>
    %46 = tpu.concatenate %44, %45 in 1 : vector<2x255xf32>, vector<2x1xf32> -> vector<2x256xf32>
    %47 = vector.shape_cast %25 : vector<1x256xi1> to vector<1x256xi1>
    %48 = vector.broadcast %47 : vector<1x256xi1> to vector<2x256xi1>
    %49 = arith.select %48, %0, %46 : vector<2x256xi1>, vector<2x256xf32>
    %50 = arith.addf %31, %37 : vector<2x256xf32>
    %51 = arith.addf %43, %49 : vector<2x256xf32>
    %52 = arith.addf %50, %51 : vector<2x256xf32>
    %cst = arith.constant 1.000000e-01 : f32
    %53 = vector.broadcast %cst : f32 to vector<2x256xf32>
    %54 = arith.mulf %53, %52 : vector<2x256xf32>
    %cst_6 = arith.constant 6.000000e-01 : f32
    %55 = vector.broadcast %cst_6 : f32 to vector<2x256xf32>
    %56 = arith.mulf %55, %0 : vector<2x256xf32>
    %57 = arith.addf %54, %56 : vector<2x256xf32>
    %cst_7 = arith.constant 3.14159274 : f32
    %58 = vector.broadcast %cst_7 : f32 to vector<2x256xf32>
    %59 = arith.mulf %58, %0 : vector<2x256xf32>
    %60 = math.sin %59 : vector<2x256xf32>
    %cst_8 = arith.constant 5.000000e-02 : f32
    %61 = vector.broadcast %cst_8 : f32 to vector<2x256xf32>
    %62 = arith.mulf %61, %60 : vector<2x256xf32>
    %63 = arith.subf %57, %62 : vector<2x256xf32>
    %c0_9 = arith.constant 0 : index
    %c0_10 = arith.constant 0 : index
    %64 = vector.load %arg2[%c0_9, %c0_10] : memref<2x256xf32, #tpu.memory_space<vmem>>, vector<2x256xf32>
    tpu.vector_store %arg2[%c0_9, %c0_10], %63 {strides = array<i32>} : memref<2x256xf32, #tpu.memory_space<vmem>>, vector<2x256xf32>,
    return
  }
  func.func @transform_0(%arg0: i32) -> (i32, i32) {
    %c0_i32 = arith.constant 0 : i32
    %c0_i32_0 = arith.constant 0 : i32
    return %arg0, %c0_i32 : i32, i32
  }
  func.func @transform_1(%arg0: i32) -> (i32, i32) {
    %c0_i32 = arith.constant 0 : i32
    %c0_i32_0 = arith.constant 0 : i32
    return %arg0, %c0_i32 : i32, i32
  }
}

</mosaic_0001>

<bundles_post_ra>
// kernel: tpu_custom_call.1
= control target key start
LH: loop header
LB: loop body
LE: loop exit
PB: predicated region body
PF: predicated region fallthrough
CT: control target
= control target key end

     0   :  { %6 = vsyncpa [#allocation3], 0  ;;  %s115_s0 = inlined_call_operand.hbm [shape: f32[8,256], index: 0, kind: input, shape index: {}]   ;;  %s116_s1 = inlined_call_operand.hbm [shape: f32[8,256], index: 1, kind: output, shape index: {}]  }
   0x1   :  { %7 = vsyncpa [#allocation4], 0  ;;  %s96_s6 = smov [#allocation2]  }
   0x2   :  { %s14_s7 = sshll.u32 %s96_s6, 4  ;;  %s15_s7 = int_to_ptr.vmem [resolvable:$true] %s14_s7 }
   0x3   :  { %s60_s8 = scalar_lea.vmem %s15_s7, 256  ;;  %p65_p1 = scmp.lt.s32.totalorder %s15_s7, %s15_s7 }
   0x4   :  { %p61_p0 = scmp.ne.s32.totalorder %s15_s7, %s60_s8  ;;  %p66_p2 = scmp.lt.s32.totalorder %s60_s8, %s60_s8 }
   0x6   :  { %p67_p3 = por %p66_p2, %p65_p1 }
   0x8   :  { %p68_p4 = pnand %p67_p3, %p61_p0 }
   0xa   :  { %71 = shalt.err (!%p68_p4)
}
   0xb   :  { %17 = dma.hbm_to_vmem [thread:$0]  %s115_s0, 256, %s15_s7, [#allocation3]  }
   0xc   :  { %92 = dma.done.wait [#allocation3], 256  }
   0xd   :  { %93 = vsyncadd [#allocation3], 4294967040  ;;  %v21_v0 = vld [vmem:[#allocation2] sm:$0xff]  ;;  %s97_s11 = smov 1   ;;  %v22_v1 = vld [vmem:[#allocation2 + $0x8] sm:$0xff]  ;;  %v27_v2 = vlaneseq  ;;  %s98_s12 = smov [#allocation5]  }
   0xe   :  { %23 = vrot.lane.b32.xlu0 %v21_v0, %s97_s11  ;;  %s40_s13 = sshll.u32 %s98_s12, 4  ;;  %s41_s13 = int_to_ptr.vmem [resolvable:$true] %s40_s13 }
   0xf   :  { %v28_v3 = vand.u32 127, %v27_v2  ;;  %s72_s0 = scalar_lea.vmem %s41_s13, 256  ;;  %p77_p6 = scmp.lt.s32.totalorder %s41_s13, %s41_s13 }
  0x10   :  { %p73_p5 = scmp.ne.s32.totalorder %s41_s13, %s72_s0  ;;  %p78_p7 = scmp.lt.s32.totalorder %s72_s0, %s72_s0 }
  0x11   :  { %vm29_vm0 = vcmp.lt.s32.totalorder %v28_v3, 1 }
  0x12   :  { %25 = vrot.lane.b32.xlu0 %v22_v1, %s97_s11  ;;  %p79_p8 = por %p78_p7, %p77_p6 }
  0x14   :  { %p80_p9 = pnand %p79_p8, %p73_p5 }
  0x80   :  { %v24_v4 = vpop.permute.xlu0 %23 }
  0x84   :  { %v26_v5 = vpop.permute.xlu0 %25 }
  0x85   :  { %v30_v6 = vsel %vm29_vm0, %v24_v4, %v26_v5  ;;  %v31_v7 = vsel %vm29_vm0, %v26_v5, %v24_v4 }
  0x86   :  { %32 = vst [vmem:[#allocation5] sm:$0xff] %v31_v7  ;;  %33 = vst [vmem:[#allocation5 + $0x8] sm:$0xff] %v30_v6 }
  0x87   :  { %83 = shalt.err (!%p80_p9)
}
  0x88   :  { %43 = dma.vmem_to_hbm [thread:$0]  %s41_s13, 256, %s116_s1, [#allocation4]  }
  0x89   :  { %94 = dma.done.wait [#allocation4], 256  }
  0x8a   :  { %95 = vsyncadd [#allocation4], 4294967040 }
  0x8b   :  { %47 = vsyncpa [#allocation3], 1 }
  0x8c   :  { %48 = vsyncpa [#allocation4], 1 }

// kernel: tpu_custom_call.1
= control target key start
LH: loop header
LB: loop body
LE: loop exit
PB: predicated region body
PF: predicated region fallthrough
CT: control target
= control target key end

     0   :  { %6 = vsyncpa [#allocation3], 0  ;;  %s481_s0 = inlined_call_operand.hbm [shape: f32[2,256], index: 0, kind: input, shape index: {}]   ;;  %s482_s1 = inlined_call_operand.hbm [shape: f32[2,256], index: 1, kind: output, shape index: {}]  }
   0x1   :  { %7 = vsyncpa [#allocation4], 0  ;;  %s370_s6 = smov [#allocation2]  }
   0x2   :  { %s14_s7 = sshll.u32 %s370_s6, 4  ;;  %s15_s7 = int_to_ptr.vmem [resolvable:$true] %s14_s7 }
   0x3   :  { %s334_s8 = scalar_lea.vmem %s15_s7, 64  ;;  %p339_p1 = scmp.lt.s32.totalorder %s15_s7, %s15_s7 }
   0x4   :  { %p335_p0 = scmp.ne.s32.totalorder %s15_s7, %s334_s8  ;;  %p340_p2 = scmp.lt.s32.totalorder %s334_s8, %s334_s8 }
   0x6   :  { %p341_p3 = por %p340_p2, %p339_p1 }
   0x8   :  { %p342_p4 = pnand %p341_p3, %p335_p0 }
   0xa   :  { %345 = shalt.err (!%p342_p4)
}
   0xb   :  { %17 = dma.hbm_to_vmem [thread:$0]  %s481_s0, 64, %s15_s7, [#allocation3]  }
   0xc   :  { %366 = dma.done.wait [#allocation3], 64  }
   0xd   :  { %367 = vsyncadd [#allocation3], 4294967232  ;;  %v22_v0 = vlaneseq  ;;  %v371_v1 = vmov 1983009808   ;;  %v399_v6 = vld [vmem:[#allocation2] sm:$0xf] }
   0xe   :  { %v59_v2 = vunpack.c.l.s4 %v371_v1  ;;  %v406_v8 = vmul.f32 3.1415927, %v399_v6  ;;  %s372_s0 = smov 112   ;;  %s373_s11 = smov 16   ;;  %v376_v21 = vmov 683565275  }
   0xf   :  { %v62_v3 = vshrl.u32 %v22_v0, 7  ;;  %s374_s12 = smov 1   ;;  %s375_s13 = smov 127   ;;  %v377_v23 = vmov 2475754826   ;;  %vm88_vm13 = vcmask 916480  }
  0x10   :  { %v60_v4 = vunpack.c.0.s8 %v59_v2  ;;  %v158_v9 = vand.u32 2139095040, %v406_v8  ;;  %v155_v12 = vand.u32 2147483647, %v406_v8  ;;  %v378_v25 = vmov 2131351028   ;;  %s382_s14 = smov [#allocation5]  }
  0x11   :  { %v379_v27 = vmov 2102212464   ;;  %v380_v29 = vmov 920167782   ;;  %v381_v36 = vmov 1326507024   ;;  %vm247_vm12 = vweird.f32 %v406_v8 }
  0x12   :  { %v397_v5 = vsub.s32 %v60_v4, %v62_v3  ;;  %v159_v11 = vshrl.u32 %v158_v9, 23  ;;  %v162_v15 = vand.u32 8388607, %v155_v12  ;;  %vm157_vm7 = vcmp.lt.s32.totalorder %v406_v8, 0  ;;  %s291_s15 = sshll.u32 %s382_s14, 4  ;;  %s292_s15 = int_to_ptr.vmem [resolvable:$true] %s291_s15 }
  0x13   :  { %vm156_vm8 = vcmp.le.f32.partialorder %v155_v12, 0.7853982  ;;  %vm71_vm14 = vcmask 130048   ;;  %vm105_vm15 = vcmask 7168   ;;  %s346_s16 = scalar_lea.vmem %s292_s15, 64  ;;  %p351_p6 = scmp.lt.s32.totalorder %s292_s15, %s292_s15 }
  0x14   :  { %v403_v7 = vrot.slane %v399_v6, %v397_v5  ;;  %v300_v13 = vadd.s32 4294967169, %v159_v11  ;;  %v163_v19 = vor.u32 8388608, %v162_v15  ;;  %p347_p5 = scmp.ne.s32.totalorder %s292_s15, %s346_s16  ;;  %p352_p7 = scmp.lt.s32.totalorder %s346_s16, %s346_s16 }
  0x16   :  { %84 = vrot.lane.b32.xlu1 %v403_v7, %s372_s0  ;;  %69 = vrot.lane.b32.xlu0 %v403_v7, %s373_s11  ;;  %v413_v10 = vcombine.high %v403_v7, %v403_v7  ;;  %v165_v14 = vadd.s32 1, %v300_v13  ;;  %v203_v38 = vshll.u32 %v163_v19, 8  ;;  %p353_p8 = por %p352_p7, %p351_p6 }
  0x18   :  { %vm166_vm0 = vcmp.gt.s32.totalorder %v165_v14, 0  ;;  %p354_p9 = pnand %p353_p8, %p347_p5 }
  0x19   :  { %v167_v16 = vsel %vm166_vm0, %v165_v14, 0 }
  0x1a   :  { %103 = vrot.lane.b32.xlu1 %v403_v7, %s374_s12  ;;  %66 = vrot.lane.b32.xlu0 %v413_v10, %s373_s11  ;;  %v169_v17 = vand.u32 31, %v167_v16  ;;  %v168_v18 = vshrl.u32 %v167_v16, 5 }
  0x1c   :  { %v170_v20 = vsub.s32 32, %v169_v17  ;;  %v172_v22 = vshll.u32 %v376_v21, %v169_v17  ;;  %v175_v24 = vshll.u32 %v377_v23, %v169_v17  ;;  %v178_v26 = vshll.u32 %v378_v25, %v169_v17 }
  0x1d   :  { %v181_v28 = vshll.u32 %v379_v27, %v169_v17  ;;  %v184_v30 = vshll.u32 %v380_v29, %v169_v17  ;;  %vm187_vm1 = vcmp.lt.s32.totalorder %v168_v18, 1  ;;  %vm190_vm2 = vcmp.lt.s32.totalorder %v168_v18, 4 }
  0x1e   :  { %86 = vrot.lane.b32.xlu1 %v413_v10, %s372_s0  ;;  %100 = vrot.lane.b32.xlu0 %v413_v10, %s374_s12  ;;  %v171_v31 = vshrl.u32 %v376_v21, %v170_v20  ;;  %v173_v32 = vshrl.u32 %v377_v23, %v170_v20  ;;  %v176_v33 = vshrl.u32 %v378_v25, %v170_v20  ;;  %vm188_vm3 = vcmp.lt.s32.totalorder %v168_v18, 2 }
  0x1f   :  { %v179_v34 = vshrl.u32 %v379_v27, %v170_v20  ;;  %v182_v35 = vshrl.u32 %v380_v29, %v170_v20  ;;  %v185_v37 = vshrl.u32 %v381_v36, %v170_v20  ;;  %vm189_vm4 = vcmp.lt.s32.totalorder %v168_v18, 3 }
  0x20   :  { %v174_v39 = vor.u32 %v173_v32, %v172_v22  ;;  %v177_v40 = vor.u32 %v176_v33, %v175_v24 }
  0x21   :  { %v180_v41 = vor.u32 %v179_v34, %v178_v26  ;;  %v183_v42 = vor.u32 %v182_v35, %v181_v28  ;;  %v186_v43 = vor.u32 %v185_v37, %v184_v30 }
  0x22   :  { %118 = vrot.lane.b32.xlu1 %v413_v10, %s375_s13  ;;  %116 = vrot.lane.b32.xlu0 %v403_v7, %s375_s13  ;;  %v191_v44 = vsel %vm187_vm1, %v171_v31, %v174_v39  ;;  %v195_v46 = vsel %vm187_vm1, %v174_v39, %v177_v40 }
  0x23   :  { %v192_v45 = vsel %vm190_vm2, %v180_v41, 2102212464  ;;  %v199_v47 = vsel %vm187_vm1, %v177_v40, %v180_v41  ;;  %v196_v49 = vsel %vm190_vm2, %v183_v42, 920167782  ;;  %v200_v50 = vsel %vm190_vm2, %v186_v43, 1326507024 }
  0x24   :  { %v193_v48 = vsel %vm189_vm4, %v177_v40, %v192_v45  ;;  %v197_v51 = vsel %vm189_vm4, %v180_v41, %v196_v49  ;;  %v201_v52 = vsel %vm189_vm4, %v183_v42, %v200_v50  ;;  %v23_v40 = vand.u32 127, %v22_v0 }
  0x25   :  { %v194_v53 = vsel %vm188_vm3, %v191_v44, %v193_v48  ;;  %v198_v54 = vsel %vm188_vm3, %v195_v46, %v197_v51  ;;  %v202_v55 = vsel %vm188_vm3, %v199_v47, %v201_v52  ;;  %v140_v0 = vmul.f32 0.6, %v399_v6 }
  0x26   :  { %v424_v56 = vmul.u32.u64.low %v203_v38, %v202_v55  ;;  %v425_v57 = vmul.u32.u64.high %v203_v38, %v202_v55, %v424_v56  ;;  %v427_v58 = vmul.u32.u64.low %v203_v38, %v198_v54  ;;  %v428_v59 = vmul.u32.u64.high %v203_v38, %v198_v54, %v427_v58 }
  0x27   :  { %v210_v60 = vmul.u32 %v203_v38, %v194_v53  ;;  %v24_v44 = vadd.s32 128, %v23_v40  ;;  %v29_v49 = vand.u32 15, %v23_v40  ;;  %vm49_vm0 = vcmp.lt.s32.totalorder %v23_v40, 16 }
  0x28   :  { %vm212_vm5 = vc.u32 %v425_v57, %v427_v58  ;;  %v213_v61 = vadd.s32 1, %v428_v59  ;;  %v211_v17 = vadd.s32 %v427_v58, %v425_v57  ;;  %vm120_vm4 = vcmask 1039360  }
  0x29   :  { %v36_v50 = vand.u32 15, %v24_v44  ;;  %vm52_vm1 = vcmp.ge.s32.totalorder %v24_v44, 240  ;;  %vm443_vm2 = vcmp.eq.s32.totalorder %v29_v49, 0 }
  0x2a   :  { %v214_v62 = vsel %vm212_vm5, %v213_v61, %v428_v59  ;;  %vm451_vm5 = vcmp.eq.s32.totalorder %v29_v49, 15 }
  0x2b   :  { %v215_v63 = vadd.s32 %v214_v62, %v210_v60  ;;  %vm447_vm3 = vcmp.eq.s32.totalorder %v36_v50, 0 }
  0x2d   :  { %v216_v1 = vadd.s32 536870912, %v215_v63 }
  0x2f   :  { %v217_v2 = vshrl.u32 %v216_v1, 30  ;;  %v148_v1 = vrot.slane %v140_v0, %v397_v5 }
  0x31   :  { %v218_v3 = vshll.u32 %v217_v2, 30  ;;  %v241_v31 = vsub.s32 4, %v217_v2 }
  0x33   :  { %v219_v4 = vsub.s32 %v215_v63, %v218_v3  ;;  %v242_v32 = vsel %vm157_vm7, %v241_v31, %v217_v2 }
  0x34   :  { %v244_v33 = vsel %vm156_vm8, 0, %v242_v32 }
  0x35   :  { %v221_v9 = vsub.s32 0, %v219_v4  ;;  %v248_v34 = vadd.s32 3, %v244_v33 }
  0x37   :  { %v301_v11 = vmin.u32 %v221_v9, %v219_v4  ;;  %v249_v37 = vand.u32 3, %v248_v34 }
  0x39   :  { %v223_v13 = vclz %v301_v11  ;;  %vm251_vm9 = vcmp.eq.s32.totalorder %v249_v37, 0  ;;  %vm254_vm10 = vcmp.eq.s32.totalorder %v249_v37, 2  ;;  %vm250_vm11 = vcmp.lt.s32.totalorder %v249_v37, 2 }
  0x3b   :  { %v302_v14 = vadd.s32 4294967294, %v223_v13 }
  0x3d   :  { %vm303_vm6 = vcmp.lt.s32.totalorder %v302_v14, 0 }
  0x3e   :  { %v226_v15 = vsel %vm303_vm6, 0, %v302_v14  ;;  %vm455_vm6 = vcmp.eq.s32.totalorder %v36_v50, 15 }
  0x3f   :  { %v231_v16 = vsub.s32 4294967266, %v226_v15  ;;  %v227_v18 = vsub.s32 32, %v226_v15  ;;  %v228_v20 = vshll.u32 %v219_v4, %v226_v15 }
  0x41   :  { %v232_v19 = vadd.s32 127, %v231_v16  ;;  %v229_v21 = vshrl.u32 %v211_v17, %v227_v18 }
  0x43   :  { %v233_v22 = vshll.u32 %v232_v19, 23  ;;  %v230_v23 = vor.u32 %v229_v21, %v228_v20 }
  0x45   :  { %v234_v24 = vor.u32 4788187, %v233_v22  ;;  %v237_v26 = vcvt.s32.f32 %v230_v23  ;;  %v149_v22 = vcombine.high %v148_v1, %v148_v1 }
  0x47   :  { %v235_v25 = vand.u32 2147483647, %v234_v24 }
  0x49   :  { %v238_v27 = vmul.f32 %v237_v26, %v235_v25 }
  0x4b   :  { %v239_v28 = vxor.u32 2147483648, %v238_v27 }
  0x4d   :  { %v240_v29 = vsel %vm157_vm7, %v239_v28, %v238_v27 }
  0x4e   :  { %v243_v30 = vsel %vm156_vm8, %v406_v8, %v240_v29 }
  0x4f   :  { %322 = vcosq.f32 %v243_v30 }
  0x50   :  { %324 = vsinq.f32 %v243_v30 }
  0x5c   :  { %v323_v35 = vpop.eup %322 }
  0x5d   :  { %v325_v36 = vpop.eup %324  ;;  %v255_v39 = vxor.u32 2147483648, %v323_v35 }
  0x5e   :  { %v252_v38 = vxor.u32 2147483648, %v325_v36 }
  0x5f   :  { %v256_v41 = vsel %vm254_vm10, %v255_v39, %v325_v36 }
  0x60   :  { %v253_v12 = vsel %vm251_vm9, %v323_v35, %v252_v38 }
  0x61   :  { %v257_v45 = vsel %vm250_vm11, %v253_v12, %v256_v41 }
  0x62   :  { %v258_v48 = vsel %vm247_vm12, nan, %v257_v45 }
  0x63   :  { %v259_v53 = vmul.f32 0.05, %v258_v48 }
  0x65   :  { %v267_v2 = vrot.slane %v259_v53, %v397_v5 }
  0x67   :  { %v268_v25 = vcombine.high %v267_v2, %v267_v2 }
  0x88   :  { %v85_v42 = vpop.permute.xlu1 %84  ;;  %v70_v43 = vpop.permute.xlu0 %69 }
  0x8c   :  { %v104_v46 = vpop.permute.xlu1 %103  ;;  %v67_v47 = vpop.permute.xlu0 %66 }
  0x8d   :  { %v75_v8 = vsel %vm71_vm14, %v67_v47, %v70_v43  ;;  %v72_v3 = vsel %vm71_vm14, %v70_v43, %v67_v47 }
  0x8e   :  { %v82_v4 = vsel %vm49_vm0, %v403_v7, %v75_v8 }
  0x90   :  { %v87_v51 = vpop.permute.xlu1 %86  ;;  %v101_v52 = vpop.permute.xlu0 %100 }
  0x91   :  { %v93_v54 = vsel %vm88_vm13, %v87_v51, %v85_v42  ;;  %v106_v57 = vsel %vm105_vm15, %v104_v46, %v101_v52  ;;  %v109_v58 = vsel %vm105_vm15, %v101_v52, %v104_v46  ;;  %v89_v60 = vsel %vm88_vm13, %v85_v42, %v87_v51 }
  0x92   :  { %v99_v61 = vsel %vm52_vm1, %v413_v10, %v93_v54  ;;  %v114_v13 = vsel %vm443_vm2, %v403_v7, %v109_v58  ;;  %v115_v14 = vsel %vm447_vm3, %v413_v10, %v106_v57  ;;  %v132_v16 = vadd.f32 %v89_v60, %v82_v4 }
  0x93   :  { %v133_v17 = vadd.f32 %v99_v61, %v72_v3 }
  0x94   :  { %v119_v62 = vpop.permute.xlu1 %118  ;;  %v117_v63 = vpop.permute.xlu0 %116 }
  0x95   :  { %v121_v9 = vsel %vm120_vm4, %v117_v63, %v119_v62  ;;  %v125_v11 = vsel %vm120_vm4, %v119_v62, %v117_v63 }
  0x96   :  { %v130_v15 = vsel %vm451_vm5, %v403_v7, %v121_v9  ;;  %v131_v5 = vsel %vm455_vm6, %v413_v10, %v125_v11 }
  0x97   :  { %v134_v18 = vadd.f32 %v130_v15, %v114_v13  ;;  %v135_v19 = vadd.f32 %v131_v5, %v115_v14 }
  0x99   :  { %v136_v20 = vadd.f32 %v134_v18, %v132_v16  ;;  %v137_v21 = vadd.f32 %v135_v19, %v133_v17 }
  0x9b   :  { %v138_v23 = vmul.f32 0.1, %v136_v20  ;;  %v139_v24 = vmul.f32 0.1, %v137_v21 }
  0x9d   :  { %v152_v26 = vadd.f32 %v148_v1, %v138_v23  ;;  %v153_v27 = vadd.f32 %v149_v22, %v139_v24 }
  0x9f   :  { %v271_v28 = vsub.f32 %v152_v26, %v267_v2  ;;  %v272_v7 = vsub.f32 %v153_v27, %v268_v25 }
  0xa1   :  { %v275_v29 = vcombine.low %v271_v28, %v272_v7 }
  0xa3   :  { %304 = vst.sshfl [vmem:[#allocation5] sm:$0x33 pattern:$0x76325410] %v275_v29 }
  0xa4   :  { %357 = shalt.err (!%p354_p9)
}
  0xa5   :  { %294 = dma.vmem_to_hbm [thread:$0]  %s292_s15, 64, %s482_s1, [#allocation4]  }
  0xa6   :  { %368 = dma.done.wait [#allocation4], 64  }
  0xa7   :  { %369 = vsyncadd [#allocation4], 4294967232 }
  0xa8   :  { %298 = vsyncpa [#allocation3], 1 }
  0xa9   :  { %299 = vsyncpa [#allocation4], 1 }

</bundles_post_ra>
